<compile_context>
chip_gen: v6e
topology: v6e:2x2x1
jax: 0.10.0
libtpu: 0.0.40
codegen_flags: <defaults>
</compile_context>

<pallas_src>
import jax
import jax.numpy as jnp
from jax.experimental import pallas as pl
from jax.experimental.pallas import tpu as pltpu

STATE_DIM = 4
ACTION_DIM = 1
IN1 = STATE_DIM + ACTION_DIM      # 5  (PyTorch layer-1 fan-in)
IN_AUG = 8                        # augmented input: [state, action, 1, 0, 0]
IN_USED = IN1 + 1                 # 6 non-zero augmented columns
H1, H2 = 400, 300
H1P, H2P = 512, 384               # hidden dims padded to lane multiples


def _round_up(x, m):
    return ((x + m - 1) // m) * m


def _default_use_vpu_layer1():
    """v5e is MXU-bound: do layer 1 on the VPU there. v6e/v7x keep the MXU."""
    try:
        kind = jax.devices()[0].device_kind.lower()
    except Exception:
        return False
    return ("v5e" in kind) or ("v5 lite" in kind) or ("v5litepod" in kind)


def _augment_inputs(state, action):
    """(B,4),(B,1) -> (B,8) = [state, action, 1, 0, 0] (concat + bias carrier)."""
    B = state.shape[0]
    ones = jnp.ones((B, 1), jnp.float32)
    zeros = jnp.zeros((B, IN_AUG - IN_USED), jnp.float32)
    return jnp.concatenate(
        [state.astype(jnp.float32), action.astype(jnp.float32), ones, zeros], axis=1)


def _make_kernel(vpu_layer1: bool):
    def kernel(x_ref, w1_ref, w2_ref, w3_ref, o_ref):
        if vpu_layer1:
            # v5e path: layer 1 as 6 rank-1 broadcast MACs on the VPU,
            # keeping the MXU exclusively for the dominant layer-2 matmul.
            x = x_ref[...]                                   # (tb, 8) f32
            w1 = w1_ref[...].astype(jnp.float32)             # (8, H1P)
            h1 = x[:, 0:1] * w1[0:1, :]
            for k in range(1, IN_USED):                      # cols 6,7 are zero
                h1 = h1 + x[:, k:k + 1] * w1[k:k + 1, :]
            h1 = jnp.maximum(h1, 0.0)                        # relu (bias folded)
        else:
            # v6e/v7x path: K=8 layer-1 matmul on the MXU (action + b1 folded).
            x = x_ref[...].astype(jnp.bfloat16)              # (tb, 8)
            h1 = jnp.maximum(
                jnp.dot(x, w1_ref[...], preferred_element_type=jnp.float32),
                0.0)                                         # (tb, H1P)

        # Layer 2: the dominant (tb,512)@(512,384) MXU matmul; b2 folded via
        # the always-1 h1 column (index 400).
        h2 = jnp.maximum(
            jnp.dot(h1.astype(jnp.bfloat16), w2_ref[...],
                    preferred_element_type=jnp.float32),
            0.0)                                             # (tb, H2P)

        # Layer 3 (N=1): f32 VPU multiply + lane reduction; b3 folded via the
        # always-1 h2 column (index 300).
        o_ref[...] = jnp.sum(h2 * w3_ref[...], axis=-1, keepdims=True)

    return kernel


def critic_forward(state, action, params, *, tb=None, use_vpu_layer1=None):
    """state: (B, 4) f32, action: (B, 1) f32 -> (B, 1) f32 Q-values."""
    w1a, w2p, w3p = params
    B = state.shape[0]
    if use_vpu_layer1 is None:
        use_vpu_layer1 = _default_use_vpu_layer1()

    x = _augment_inputs(state, action)                       # (B, 8)

    if tb is None:
        if B <= 128:
            # Small-batch / latency path: sublane (8) alignment only, one step.
            tb = _round_up(max(B, 8), 8)
        else:
            # Large batch: >=2 balanced "parallel" grid steps (feeds both v7x
            # TensorCores), tile capped at 2048 rows so live intermediates
            # (~10 MiB) stay well inside v7x's scoped VMEM.
            tb = min(2048, _round_up(pl.cdiv(B, 2), 128))
    Bp = _round_up(B, tb)
    if Bp != B:
        x = jnp.pad(x, ((0, Bp - B), (0, 0)))

    grid = (Bp // tb,)

    def resident(arr):
        # Full-array block + constant index map: DMA'd once, VMEM-resident.
        return pl.BlockSpec(arr.shape, lambda i: (0, 0))

    out = pl.pallas_call(
        _make_kernel(use_vpu_layer1),
        out_shape=jax.ShapeDtypeStruct((Bp, 1), jnp.float32),
        grid=grid,
        in_specs=[pl.BlockSpec((tb, IN_AUG), lambda i: (i, 0)),
                  resident(w1a), resident(w2p), resident(w3p)],
        out_specs=pl.BlockSpec((tb, 1), lambda i: (i, 0)),
        compiler_params=pltpu.CompilerParams(
            dimension_semantics=("parallel",),
            vmem_limit_bytes=32 * 1024 * 1024),
    )(x, w1a, w2p, w3p)
    return out[:B]


def init_raw_params(key):
    """PyTorch nn.Linear default init: U(-1/sqrt(fan_in), 1/sqrt(fan_in))."""
    k1, k2, k3, k4, k5, k6 = jax.random.split(key, 6)

    def u(k, shape, fan_in):
        bound = 1.0 / jnp.sqrt(jnp.float32(fan_in))
        return jax.random.uniform(k, shape, jnp.float32, -bound, bound)

    w1 = u(k1, (IN1, H1), IN1)
    b1 = u(k2, (H1,), IN1)
    w2 = u(k3, (H1, H2), H1)
    b2 = u(k4, (H2,), H1)
    w3 = u(k5, (H2, 1), H2)
    b3 = u(k6, (1,), H2)
    return w1, b1, w2, b2, w3, b3


def pack_params(raw):
    """Fold action column + all biases into padded, MXU-ready operands."""
    w1, b1, w2, b2, w3, b3 = raw

    # Layer 1: (8, 512) = [w1 rows (state+action); b1 row; zero rows].
    # The bias row also sets column H1 (=400) to 1 -> h1[:, 400] == 1 post-ReLU.
    w1a = jnp.zeros((IN_AUG, H1P), jnp.float32)
    w1a = w1a.at[:IN1, :H1].set(w1)
    w1a = w1a.at[IN1, :H1].set(b1)
    w1a = w1a.at[IN1, H1].set(1.0)

    # Layer 2: (512, 384); row 400 carries b2 and lights h2[:, 300] = 1.
    w2p = jnp.zeros((H1P, H2P), jnp.float32)
    w2p = w2p.at[:H1, :H2].set(w2)
    w2p = w2p.at[H1, :H2].set(b2)
    w2p = w2p.at[H1, H2].set(1.0)

    # Layer 3: f32 VPU reduction row; column 300 carries b3.
    w3p = jnp.zeros((1, H2P), jnp.float32)
    w3p = w3p.at[0, :H2].set(w3[:, 0])
    w3p = w3p.at[0, H2].set(b3[0])

    return (w1a.astype(jnp.bfloat16), w2p.astype(jnp.bfloat16), w3p)


def _reference_mirror(x_aug, params, use_vpu_layer1):
    """Pure-JAX reference mirroring the kernel's bf16/f32 numerics."""
    w1a, w2p, w3p = params
    if use_vpu_layer1:
        h1 = jnp.dot(x_aug, w1a.astype(jnp.float32))
    else:
        h1 = jnp.dot(x_aug.astype(jnp.bfloat16), w1a,
                     preferred_element_type=jnp.float32)
    h1 = jnp.maximum(h1, 0.0)
    h2 = jnp.maximum(
        jnp.dot(h1.astype(jnp.bfloat16), w2p, preferred_element_type=jnp.float32),
        0.0)
    return jnp.sum(h2 * w3p, axis=-1, keepdims=True)


def _reference_f32(state, action, raw):
    """Pure-f32 PyTorch-style math on the original (unfolded) parameters."""
    w1, b1, w2, b2, w3, b3 = raw
    x = jnp.concatenate([state, action], axis=1)
    h1 = jnp.maximum(x @ w1 + b1, 0.0)
    h2 = jnp.maximum(h1 @ w2 + b2, 0.0)
    return h2 @ w3 + b3


if __name__ == "__main__":
    key = jax.random.PRNGKey(0)
    k_params, k_state, k_action = jax.random.split(key, 3)

    B = 8
    raw = init_raw_params(k_params)
    params = pack_params(raw)
    state = jax.random.normal(k_state, (B, STATE_DIM), jnp.float32)
    action = jax.random.normal(k_action, (B, ACTION_DIM), jnp.float32)

    out = jax.block_until_ready(critic_forward(state, action, params))
    assert out.shape == (B, 1), out.shape

    # Check against a reference that mirrors the kernel's exact numerics.
    x_aug = _augment_inputs(state, action)
    ref = _reference_mirror(x_aug, params, _default_use_vpu_layer1())
    assert jnp.allclose(out, ref, atol=2e-3, rtol=2e-2), (out, ref)

    # Check the action/bias folding end-to-end against pure-f32 math
    # (loose tolerance covers the bf16 weight storage).
    ref32 = _reference_f32(state, action, raw)
    assert jnp.allclose(out, ref32, atol=2e-2, rtol=5e-2), (out, ref32)

    print("KERNEL_OK")
</pallas_src>

<mosaic_0001>
module attributes {stable_mosaic.version = 11 : i64} {
  func.func @kernel(%arg0: i32, %arg1: memref<8x8xf32, #tpu.memory_space<vmem>>, %arg2: memref<8x512xbf16, #tpu.memory_space<vmem>>, %arg3: memref<512x384xbf16, #tpu.memory_space<vmem>>, %arg4: memref<1x384xf32, #tpu.memory_space<vmem>>, %arg5: memref<8x1xf32, #tpu.memory_space<vmem>>) attributes {dimension_semantics = [#tpu.dimension_semantics<parallel>], iteration_bounds = array<i64: 1>, scalar_prefetch = 0 : i64, scratch_operands = 0 : i64, tpu.core_type = #tpu.core_type<tc>, window_params = [{transform_indices = @transform_0, window_bounds = array<i64: 8, 8>}, {pipeline_mode = #tpu.pipeline_mode<synchronous>, transform_indices = @transform_1, window_bounds = array<i64: 8, 512>}, {pipeline_mode = #tpu.pipeline_mode<synchronous>, transform_indices = @transform_2, window_bounds = array<i64: 512, 384>}, {pipeline_mode = #tpu.pipeline_mode<synchronous>, transform_indices = @transform_3, window_bounds = array<i64: 1, 384>}, {transform_indices = @transform_4, window_bounds = array<i64: 8, 1>}]} {
    %c0 = arith.constant 0 : index
    %c0_0 = arith.constant 0 : index
    %0 = vector.load %arg1[%c0, %c0_0] : memref<8x8xf32, #tpu.memory_space<vmem>>, vector<8x8xf32>
    %1 = arith.truncf %0 : vector<8x8xf32> to vector<8x8xbf16>
    %c0_1 = arith.constant 0 : index
    %c0_2 = arith.constant 0 : index
    %2 = vector.load %arg2[%c0_1, %c0_2] : memref<8x512xbf16, #tpu.memory_space<vmem>>, vector<8x512xbf16>
    %cst = arith.constant dense<0.000000e+00> : vector<8x512xf32>
    %3 = tpu.matmul %1, %2, %cst {dimension_numbers = #tpu.dot_dimension_numbers<[1], [0], [0], [1], [0, 0, 1, 1], [], []>} : vector<8x8xbf16>, vector<8x512xbf16>, vector<8x512xf32> -> vector<8x512xf32>
    %cst_3 = arith.constant 0.000000e+00 : f32
    %4 = vector.broadcast %cst_3 : f32 to vector<8x512xf32>
    %5 = arith.maximumf %3, %4 : vector<8x512xf32>
    %6 = arith.truncf %5 : vector<8x512xf32> to vector<8x512xbf16>
    %c0_4 = arith.constant 0 : index
    %c0_5 = arith.constant 0 : index
    %7 = vector.load %arg3[%c0_4, %c0_5] : memref<512x384xbf16, #tpu.memory_space<vmem>>, vector<512x384xbf16>
    %cst_6 = arith.constant dense<0.000000e+00> : vector<8x384xf32>
    %8 = tpu.matmul %6, %7, %cst_6 {dimension_numbers = #tpu.dot_dimension_numbers<[1], [0], [0], [1], [0, 0, 1, 1], [], []>} : vector<8x512xbf16>, vector<512x384xbf16>, vector<8x384xf32> -> vector<8x384xf32>
    %cst_7 = arith.constant 0.000000e+00 : f32
    %9 = vector.broadcast %cst_7 : f32 to vector<8x384xf32>
    %10 = arith.maximumf %8, %9 : vector<8x384xf32>
    %c0_8 = arith.constant 0 : index
    %c0_9 = arith.constant 0 : index
    %11 = vector.load %arg4[%c0_8, %c0_9] : memref<1x384xf32, #tpu.memory_space<vmem>>, vector<1x384xf32>
    %12 = vector.broadcast %11 : vector<1x384xf32> to vector<8x384xf32>
    %13 = arith.mulf %10, %12 : vector<8x384xf32>
    %cst_10 = arith.constant dense<0.000000e+00> : vector<8xf32>
    %14 = vector.multi_reduction <add>, %13, %cst_10 [1] : vector<8x384xf32> to vector<8xf32>
    %15 = vector.shape_cast %14 : vector<8xf32> to vector<8x1xf32>
    %c0_11 = arith.constant 0 : index
    %c0_12 = arith.constant 0 : index
    %16 = vector.load %arg5[%c0_11, %c0_12] : memref<8x1xf32, #tpu.memory_space<vmem>>, vector<8x1xf32>
    tpu.vector_store %arg5[%c0_11, %c0_12], %15 {strides = array<i32>} : memref<8x1xf32, #tpu.memory_space<vmem>>, vector<8x1xf32>,
    return
  }
  func.func @transform_0(%arg0: i32) -> (i32, i32) {
    %c0_i32 = arith.constant 0 : i32
    %c0_i32_0 = arith.constant 0 : i32
    return %arg0, %c0_i32 : i32, i32
  }
  func.func @transform_1(%arg0: i32) -> (i32, i32) {
    %c0_i32 = arith.constant 0 : i32
    %c0_i32_0 = arith.constant 0 : i32
    %c0_i32_1 = arith.constant 0 : i32
    return %c0_i32, %c0_i32_0 : i32, i32
  }
  func.func @transform_2(%arg0: i32) -> (i32, i32) {
    %c0_i32 = arith.constant 0 : i32
    %c0_i32_0 = arith.constant 0 : i32
    %c0_i32_1 = arith.constant 0 : i32
    return %c0_i32, %c0_i32_0 : i32, i32
  }
  func.func @transform_3(%arg0: i32) -> (i32, i32) {
    %c0_i32 = arith.constant 0 : i32
    %c0_i32_0 = arith.constant 0 : i32
    %c0_i32_1 = arith.constant 0 : i32
    return %c0_i32, %c0_i32_0 : i32, i32
  }
  func.func @transform_4(%arg0: i32) -> (i32, i32) {
    %c0_i32 = arith.constant 0 : i32
    %c0_i32_0 = arith.constant 0 : i32
    return %arg0, %c0_i32 : i32, i32
  }
}

</mosaic_0001>

<bundles_post_ra>
// kernel: tpu_custom_call.1
= control target key start
LH: loop header
LB: loop body
LE: loop exit
PB: predicated region body
PF: predicated region fallthrough
CT: control target
= control target key end

     0   :  { %9 = vsyncpa [#allocation3], 0  ;;  %s1417_s0 = inlined_call_operand.hbm [shape: f32[8,8], index: 0, kind: input, shape index: {}]   ;;  %s1418_s1 = inlined_call_operand.hbm [shape: bf16[8,512], index: 1, kind: input, shape index: {}]   ;;  %s1419_s2 = inlined_call_operand.hbm [shape: bf16[512,384], index: 2, kind: input, shape index: {}]   ;;  %s1420_s3 = inlined_call_operand.vmem [shape: f32[1,384], index: 3, kind: input, shape index: {}]   ;;  %s1421_s4 = inlined_call_operand.vmem [shape: f32[8,1], index: 4, kind: output, shape index: {}]  }
   0x1   :  { %10 = vsyncpa [#allocation5], 0  ;;  %s1363_s15 = smov [#allocation4]   ;;  %s1364_s17 = smov [#allocation2]  }
   0x2   :  { %s27_s16 = sshll.u32 %s1363_s15, 4  ;;  %s17_s18 = sshll.u32 %s1364_s17, 4  ;;  %s28_s16 = int_to_ptr.vmem [resolvable:$true] %s27_s16  ;;  %s18_s18 = int_to_ptr.vmem [resolvable:$true] %s17_s18 }
   0x3   :  { %s1307_s19 = scalar_lea.vmem %s28_s16, 256  ;;  %p1312_p1 = scmp.lt.s32.totalorder %s28_s16, %s28_s16 }
   0x4   :  { %p1308_p0 = scmp.ne.s32.totalorder %s28_s16, %s1307_s19  ;;  %p1313_p2 = scmp.lt.s32.totalorder %s1307_s19, %s1307_s19 }
   0x6   :  { %p1314_p3 = por %p1313_p2, %p1312_p1 }
   0x8   :  { %p1315_p4 = pnand %p1314_p3, %p1308_p0 }
   0xa   :  { %1318 = shalt.err (!%p1315_p4)
}
   0xb   :  { %30 = dma.hbm_to_vmem [thread:$0]  %s1418_s1, 256, %s28_s16, [#allocation5]  }
   0xc   :  { %s1327_s22 = scalar_lea.vmem %s18_s18, 128  ;;  %p1332_p6 = scmp.lt.s32.totalorder %s18_s18, %s18_s18 }
   0xd   :  { %p1328_p5 = scmp.ne.s32.totalorder %s18_s18, %s1327_s22  ;;  %p1333_p7 = scmp.lt.s32.totalorder %s1327_s22, %s1327_s22 }
   0xf   :  { %p1334_p8 = por %p1333_p7, %p1332_p6 }
  0x11   :  { %p1335_p9 = pnand %p1334_p8, %p1328_p5 }
  0x13   :  { %1338 = shalt.err (!%p1335_p9)
}
  0x14   :  { %20 = dma.hbm_to_vmem [thread:$0]  %s1417_s0, 128, %s18_s18, [#allocation3]  }
  0x15   :  { %s1365_s25 = smov [#allocation6]  }
  0x16   :  { %s36_s26 = sshll.u32 %s1365_s25, 4  ;;  %s37_s26 = int_to_ptr.vmem [resolvable:$true] %s36_s26 }
  0x17   :  { %s1347_s27 = scalar_lea.vmem %s37_s26, 12288  ;;  %p1352_p11 = scmp.lt.s32.totalorder %s37_s26, %s37_s26 }
  0x18   :  { %p1348_p10 = scmp.ne.s32.totalorder %s37_s26, %s1347_s27  ;;  %p1353_p12 = scmp.lt.s32.totalorder %s1347_s27, %s1347_s27 }
  0x1a   :  { %p1354_p13 = por %p1353_p12, %p1352_p11 }
  0x1c   :  { %p1355_p0 = pnand %p1354_p13, %p1348_p10 }
  0x1e   :  { %1358 = shalt.err (!%p1355_p0)
}
  0x1f   :  { %s1366_s1 = smov 192   ;;  %s1367_s28 = smov 12  }
  0x20   :  { %42 = dma.hbm_to_vmem [thread:$0]  %s1419_s2, 12288, %s37_s26, [#allocation5], %s1366_s1, %s1366_s1, %s1367_s28  }
  0x21   :  { %1359 = dma.done.wait [#allocation3], 128  }
  0x22   :  { %1360 = vsyncadd [#allocation3], 4294967168 }
  0x23   :  { %1361 = dma.done.wait [#allocation5], 12544  }
  0x24   :  { %1362 = vsyncadd [#allocation5], 4294954752  ;;  %v1368_v0 = vmov 0   ;;  %v57_v1 = vld [vmem:[#allocation4] sm:$0xff]  ;;  %vm73_vm0 = vcmask 1043456   ;;  %v58_v2 = vld [vmem:[#allocation4 + $0x8] sm:$0xff] }
  0x25   :  { %118 = vmatprep.mubr.bf16.mxu0 %v1368_v0  ;;  %159 = vmatprep.mubr.bf16.mxu1 %v1368_v0  ;;  %v55_v3 = vld [vmem:[#allocation2] sm:$0xff]  ;;  %v1014_v4 = vcombine.high %v57_v1, %v57_v1  ;;  %v1016_v5 = vcombine.high %v58_v2, %v58_v2  ;;  %v1013_v6 = vcombine.low %v57_v1, %v57_v1  ;;  %vm69_vm1 = vcmask 64512   ;;  %v1179_v15 = vld [vmem:[#allocation6 + $0x94] ss:$12 sps:$4 sm:$0xff]   ;;  %v1177_v17 = vld [vmem:[#allocation6 + $0x90] ss:$12 sps:$4 sm:$0xff]  }
  0x26   :  { %v1015_v7 = vcombine.low %v58_v2, %v58_v2  ;;  %v1173_v8 = vld [vmem:[#allocation6 + $0xac] ss:$12 sps:$4 sm:$0xff]   ;;  %v56_v11 = vpack.c.bf16 %v55_v3, %v55_v3  ;;  %v1171_v12 = vld [vmem:[#allocation6 + $0xa8] ss:$12 sps:$4 sm:$0xff]   ;;  %v1180_v18 = vld [vmem:[#allocation6 + $0x210] ss:$12 sps:$4 sm:$0xff]  }
  0x27   :  { %1017 = vmatprep.subr.msk.bf16.mxu0 %vm73_vm0, %v1014_v4  ;;  %1019 = vmatprep.subr.msk.bf16.mxu1 %vm73_vm0, %v1016_v5  ;;  %v75_v9 = vsel %vm73_vm0, %v1013_v6, 0  ;;  %v1176_v13 = vld [vmem:[#allocation6 + $0x22c] ss:$12 sps:$4 sm:$0xff]   ;;  %v1174_v14 = vld [vmem:[#allocation6 + $0x228] ss:$12 sps:$4 sm:$0xff]   ;;  %vm1005_vm2 = vcmask 7168  }
  0x28   :  { %v81_v10 = vsel %vm73_vm0, %v1015_v7, 0  ;;  %101 = vmatpush1.bf16.msra.mxu0 %v75_v9  ;;  %v1182_v16 = vld [vmem:[#allocation6 + $0x214] ss:$12 sps:$4 sm:$0xff]   ;;  %v1185_v19 = vld [vmem:[#allocation6 + $0x7c] ss:$12 sps:$4 sm:$0xff]  }
  0x29   :  { %142 = vmatpush1.bf16.msra.mxu1 %v81_v10  ;;  %816 = vmatprep.subr.bf16.mxu0 %v1173_v8  ;;  %v1188_v20 = vld [vmem:[#allocation6 + $0x1fc] ss:$12 sps:$4 sm:$0xff]   ;;  %v1183_v21 = vld [vmem:[#allocation6 + $0x78] ss:$12 sps:$4 sm:$0xff]   ;;  %v1189_v25 = vld [vmem:[#allocation6 + $0x60] ss:$12 sps:$4 sm:$0xff]  }
  0x2a   :  { %857 = vmatprep.subr.bf16.mxu1 %v1176_v13  ;;  %v1186_v22 = vld [vmem:[#allocation6 + $0x1f8] ss:$12 sps:$4 sm:$0xff]   ;;  %v1192_v26 = vld [vmem:[#allocation6 + $0x1e0] ss:$12 sps:$4 sm:$0xff]   ;;  %v1195_v29 = vld [vmem:[#allocation6 + $0x48] ss:$12 sps:$4 sm:$0xff]  }
  0x2b   :  { %1018 = vmatmul.mubr.msk.bf16.vlgmr.msra.gmra.mxu0 %vm69_vm1, %v56_v11  ;;  %v1191_v23 = vld [vmem:[#allocation6 + $0x64] ss:$12 sps:$4 sm:$0xff]   ;;  %v1197_v27 = vld [vmem:[#allocation6 + $0x4c] ss:$12 sps:$4 sm:$0xff]   ;;  %v1198_v30 = vld [vmem:[#allocation6 + $0x1c8] ss:$12 sps:$4 sm:$0xff]  }
  0x2c   :  { %1020 = vmatmul.mubr.msk.bf16.vlgmr.msra.gmra.mxu1 %vm69_vm1, %v56_v11  ;;  %817 = vmatpush1.bf16.msra.mxu0 %v1171_v12  ;;  %v1194_v24 = vld [vmem:[#allocation6 + $0x1e4] ss:$12 sps:$4 sm:$0xff]   ;;  %v1200_v28 = vld [vmem:[#allocation6 + $0x1cc] ss:$12 sps:$4 sm:$0xff]   ;;  %v1203_v31 = vld [vmem:[#allocation6 + $0x34] ss:$12 sps:$4 sm:$0xff]  }
  0x2d   :  { %858 = vmatpush1.bf16.msra.mxu1 %v1174_v14  ;;  %818 = vmatprep.subr.bf16.mxu0 %v1179_v15  ;;  %v1206_v32 = vld [vmem:[#allocation6 + $0x1b4] ss:$12 sps:$4 sm:$0xff]   ;;  %v1201_v33 = vld [vmem:[#allocation6 + $0x30] ss:$12 sps:$4 sm:$0xff]   ;;  %v1207_v37 = vld [vmem:[#allocation6 + $0x18] ss:$12 sps:$4 sm:$0xff]  }
  0x2e   :  { %859 = vmatprep.subr.bf16.mxu1 %v1182_v16  ;;  %v1204_v34 = vld [vmem:[#allocation6 + $0x1b0] ss:$12 sps:$4 sm:$0xff]   ;;  %v1210_v38 = vld [vmem:[#allocation6 + $0x198] ss:$12 sps:$4 sm:$0xff]   ;;  %v1213_v41 = vld [vmem:[#allocation6] ss:$12 sps:$4 sm:$0xff]  }
  0x2f   :  { %v1209_v35 = vld [vmem:[#allocation6 + $0x1c] ss:$12 sps:$4 sm:$0xff]   ;;  %v1215_v39 = vld [vmem:[#allocation6 + $0x4] ss:$12 sps:$4 sm:$0xff]   ;;  %v1216_v42 = vld [vmem:[#allocation6 + $0x180] ss:$12 sps:$4 sm:$0xff]  }
  0x30   :  { %819 = vmatpush1.bf16.msra.mxu0 %v1177_v17  ;;  %v1212_v36 = vld [vmem:[#allocation6 + $0x19c] ss:$12 sps:$4 sm:$0xff]   ;;  %v1218_v40 = vld [vmem:[#allocation6 + $0x184] ss:$12 sps:$4 sm:$0xff]   ;;  %v1221_v43 = vld [vmem:[#allocation6 + $0x16c] ss:$12 sps:$4 sm:$0xff]  }
  0x31   :  { %860 = vmatpush1.bf16.msra.mxu1 %v1180_v18  ;;  %820 = vmatprep.subr.bf16.mxu0 %v1185_v19  ;;  %v1224_v44 = vld [vmem:[#allocation6 + $0x2ec] ss:$12 sps:$4 sm:$0xff]   ;;  %v1219_v45 = vld [vmem:[#allocation6 + $0x168] ss:$12 sps:$4 sm:$0xff]   ;;  %v1225_v49 = vld [vmem:[#allocation6 + $0x150] ss:$12 sps:$4 sm:$0xff]  }
  0x32   :  { %861 = vmatprep.subr.bf16.mxu1 %v1188_v20  ;;  %v1222_v46 = vld [vmem:[#allocation6 + $0x2e8] ss:$12 sps:$4 sm:$0xff]   ;;  %v1228_v50 = vld [vmem:[#allocation6 + $0x2d0] ss:$12 sps:$4 sm:$0xff]   ;;  %v1231_v53 = vld [vmem:[#allocation6 + $0x138] ss:$12 sps:$4 sm:$0xff]  }
  0x33   :  { %v1227_v47 = vld [vmem:[#allocation6 + $0x154] ss:$12 sps:$4 sm:$0xff]   ;;  %v1233_v51 = vld [vmem:[#allocation6 + $0x13c] ss:$12 sps:$4 sm:$0xff]   ;;  %v1234_v54 = vld [vmem:[#allocation6 + $0x2b8] ss:$12 sps:$4 sm:$0xff]  }
  0x34   :  { %821 = vmatpush1.bf16.msra.mxu0 %v1183_v21  ;;  %v1230_v48 = vld [vmem:[#allocation6 + $0x2d4] ss:$12 sps:$4 sm:$0xff]   ;;  %v1236_v52 = vld [vmem:[#allocation6 + $0x2bc] ss:$12 sps:$4 sm:$0xff]   ;;  %v1239_v55 = vld [vmem:[#allocation6 + $0x124] ss:$12 sps:$4 sm:$0xff]  }
  0x35   :  { %862 = vmatpush1.bf16.msra.mxu1 %v1186_v22  ;;  %822 = vmatprep.subr.bf16.mxu0 %v1191_v23  ;;  %v1242_v56 = vld [vmem:[#allocation6 + $0x2a4] ss:$12 sps:$4 sm:$0xff]   ;;  %v1237_v57 = vld [vmem:[#allocation6 + $0x120] ss:$12 sps:$4 sm:$0xff]   ;;  %v1243_v61 = vld [vmem:[#allocation6 + $0x108] ss:$12 sps:$4 sm:$0xff]  }
  0x36   :  { %863 = vmatprep.subr.bf16.mxu1 %v1194_v24  ;;  %v1240_v58 = vld [vmem:[#allocation6 + $0x2a0] ss:$12 sps:$4 sm:$0xff]   ;;  %v1246_v62 = vld [vmem:[#allocation6 + $0x288] ss:$12 sps:$4 sm:$0xff]   ;;  %v1249_v1 = vld [vmem:[#allocation6 + $0xf0] ss:$12 sps:$4 sm:$0xff]  }
  0x37   :  { %v1245_v59 = vld [vmem:[#allocation6 + $0x10c] ss:$12 sps:$4 sm:$0xff]   ;;  %v1251_v63 = vld [vmem:[#allocation6 + $0xf4] ss:$12 sps:$4 sm:$0xff]   ;;  %v1252_v2 = vld [vmem:[#allocation6 + $0x270] ss:$12 sps:$4 sm:$0xff]  }
  0x38   :  { %823 = vmatpush1.bf16.msra.mxu0 %v1189_v25  ;;  %v1248_v60 = vld [vmem:[#allocation6 + $0x28c] ss:$12 sps:$4 sm:$0xff]   ;;  %v1254_v0 = vld [vmem:[#allocation6 + $0x274] ss:$12 sps:$4 sm:$0xff]   ;;  %v1257_v3 = vld [vmem:[#allocation6 + $0xdc] ss:$12 sps:$4 sm:$0xff]  }
  0x39   :  { %864 = vmatpush1.bf16.msra.mxu1 %v1192_v26  ;;  %824 = vmatprep.subr.bf16.mxu0 %v1197_v27  ;;  %v1260_v4 = vld [vmem:[#allocation6 + $0x25c] ss:$12 sps:$4 sm:$0xff]   ;;  %v1255_v5 = vld [vmem:[#allocation6 + $0xd8] ss:$12 sps:$4 sm:$0xff]   ;;  %v1261_v9 = vld [vmem:[#allocation6 + $0xc0] ss:$12 sps:$4 sm:$0xff]  }
  0x3a   :  { %865 = vmatprep.subr.bf16.mxu1 %v1200_v28  ;;  %v1258_v6 = vld [vmem:[#allocation6 + $0x258] ss:$12 sps:$4 sm:$0xff]   ;;  %v1264_v10 = vld [vmem:[#allocation6 + $0x240] ss:$12 sps:$4 sm:$0xff]   ;;  %v1267_v11 = vld [vmem:[#allocation6 + $0x170] ss:$12 sps:$4 sm:$0xff]  }
  0x3b   :  { %v1263_v7 = vld [vmem:[#allocation6 + $0xc4] ss:$12 sps:$4 sm:$0xff]  }
  0x3c   :  { %825 = vmatpush1.bf16.msra.mxu0 %v1195_v29  ;;  %v1266_v8 = vld [vmem:[#allocation6 + $0x244] ss:$12 sps:$4 sm:$0xff]  }
  0x3d   :  { %866 = vmatpush1.bf16.msra.mxu1 %v1198_v30  ;;  %826 = vmatprep.subr.bf16.mxu0 %v1203_v31  ;;  %v1268_v12 = vld [vmem:[#allocation6 + $0x2f0] ss:$12 sps:$4 sm:$0xff]   ;;  %v1271_v31 = vld [vmem:[#allocation6 + $0x158] ss:$12 sps:$4 sm:$0xff]  }
  0x3e   :  { %867 = vmatprep.subr.bf16.mxu1 %v1206_v32  ;;  %v1269_v25 = vld [vmem:[#allocation6 + $0xb0] ss:$12 sps:$4 sm:$0xff]   ;;  %v1272_v32 = vld [vmem:[#allocation6 + $0x2d8] ss:$12 sps:$4 sm:$0xff]  }
  0x3f   :  { %v1270_v26 = vld [vmem:[#allocation6 + $0x230] ss:$12 sps:$4 sm:$0xff]  }
  0x40   :  { %827 = vmatpush1.bf16.msra.mxu0 %v1201_v33  ;;  %v1273_v33 = vld [vmem:[#allocation6 + $0x98] ss:$12 sps:$4 sm:$0xff]  }
  0x41   :  { %868 = vmatpush1.bf16.msra.mxu1 %v1204_v34  ;;  %828 = vmatprep.subr.bf16.mxu0 %v1209_v35  ;;  %v1274_v34 = vld [vmem:[#allocation6 + $0x218] ss:$12 sps:$4 sm:$0xff]   ;;  %v1275_v35 = vld [vmem:[#allocation6 + $0x140] ss:$12 sps:$4 sm:$0xff]  }
  0x42   :  { %869 = vmatprep.subr.bf16.mxu1 %v1212_v36  ;;  %v1276_v36 = vld [vmem:[#allocation6 + $0x2c0] ss:$12 sps:$4 sm:$0xff]  }
  0x44   :  { %829 = vmatpush1.bf16.msra.mxu0 %v1207_v37  ;;  %v1277_v37 = vld [vmem:[#allocation6 + $0x80] ss:$12 sps:$4 sm:$0xff]  }
  0x45   :  { %870 = vmatpush1.bf16.msra.mxu1 %v1210_v38  ;;  %830 = vmatprep.subr.bf16.mxu0 %v1215_v39  ;;  %v1278_v38 = vld [vmem:[#allocation6 + $0x200] ss:$12 sps:$4 sm:$0xff]   ;;  %v1279_v39 = vld [vmem:[#allocation6 + $0x128] ss:$12 sps:$4 sm:$0xff]  }
  0x46   :  { %871 = vmatprep.subr.bf16.mxu1 %v1218_v40  ;;  %v1280_v40 = vld [vmem:[#allocation6 + $0x2a8] ss:$12 sps:$4 sm:$0xff]  }
  0x48   :  { %831 = vmatpush1.bf16.msra.mxu0 %v1213_v41  ;;  %v1281_v41 = vld [vmem:[#allocation6 + $0x68] ss:$12 sps:$4 sm:$0xff]  }
  0x49   :  { %872 = vmatpush1.bf16.msra.mxu1 %v1216_v42  ;;  %832 = vmatprep.subr.bf16.mxu0 %v1221_v43  ;;  %v1282_v42 = vld [vmem:[#allocation6 + $0x1e8] ss:$12 sps:$4 sm:$0xff]   ;;  %v1283_v43 = vld [vmem:[#allocation6 + $0x110] ss:$12 sps:$4 sm:$0xff]  }
  0x4a   :  { %873 = vmatprep.subr.bf16.mxu1 %v1224_v44  ;;  %v1284_v44 = vld [vmem:[#allocation6 + $0x290] ss:$12 sps:$4 sm:$0xff]  }
  0x4c   :  { %833 = vmatpush2.bf16.msra.mxu0 %v1219_v45  ;;  %v1285_v45 = vld [vmem:[#allocation6 + $0x50] ss:$12 sps:$4 sm:$0xff]  }
  0x4d   :  { %874 = vmatpush2.bf16.msra.mxu1 %v1222_v46  ;;  %834 = vmatprep.subr.bf16.mxu0 %v1227_v47  ;;  %v1286_v46 = vld [vmem:[#allocation6 + $0x1d0] ss:$12 sps:$4 sm:$0xff]   ;;  %v1287_v47 = vld [vmem:[#allocation6 + $0xf8] ss:$12 sps:$4 sm:$0xff]  }
  0x4e   :  { %875 = vmatprep.subr.bf16.mxu1 %v1230_v48  ;;  %v1288_v48 = vld [vmem:[#allocation6 + $0x278] ss:$12 sps:$4 sm:$0xff]  }
  0x50   :  { %835 = vmatpush2.bf16.msra.mxu0 %v1225_v49  ;;  %v1289_v49 = vld [vmem:[#allocation6 + $0x38] ss:$12 sps:$4 sm:$0xff]  }
  0x51   :  { %876 = vmatpush2.bf16.msra.mxu1 %v1228_v50  ;;  %836 = vmatprep.subr.bf16.mxu0 %v1233_v51  ;;  %v1290_v50 = vld [vmem:[#allocation6 + $0x1b8] ss:$12 sps:$4 sm:$0xff]   ;;  %v1291_v51 = vld [vmem:[#allocation6 + $0xe0] ss:$12 sps:$4 sm:$0xff]  }
  0x52   :  { %877 = vmatprep.subr.bf16.mxu1 %v1236_v52  ;;  %v1292_v52 = vld [vmem:[#allocation6 + $0x260] ss:$12 sps:$4 sm:$0xff]  }
  0x54   :  { %837 = vmatpush2.bf16.msra.mxu0 %v1231_v53  ;;  %v1293_v53 = vld [vmem:[#allocation6 + $0x20] ss:$12 sps:$4 sm:$0xff]  }
  0x55   :  { %878 = vmatpush2.bf16.msra.mxu1 %v1234_v54  ;;  %838 = vmatprep.subr.bf16.mxu0 %v1239_v55  ;;  %v1294_v54 = vld [vmem:[#allocation6 + $0x1a0] ss:$12 sps:$4 sm:$0xff]   ;;  %v1295_v55 = vld [vmem:[#allocation6 + $0xc8] ss:$12 sps:$4 sm:$0xff]  }
  0x56   :  { %879 = vmatprep.subr.bf16.mxu1 %v1242_v56  ;;  %v1296_v56 = vld [vmem:[#allocation6 + $0x248] ss:$12 sps:$4 sm:$0xff]  }
  0x58   :  { %839 = vmatpush2.bf16.msra.mxu0 %v1237_v57  ;;  %v1297_v57 = vld [vmem:[#allocation6 + $0x8] ss:$12 sps:$4 sm:$0xff]  }
  0x59   :  { %880 = vmatpush2.bf16.msra.mxu1 %v1240_v58  ;;  %840 = vmatprep.subr.bf16.mxu0 %v1245_v59  ;;  %v1298_v58 = vld [vmem:[#allocation6 + $0x188] ss:$12 sps:$4 sm:$0xff]  }
  0x5a   :  { %881 = vmatprep.subr.bf16.mxu1 %v1248_v60 }
  0x5c   :  { %841 = vmatpush2.bf16.msra.mxu0 %v1243_v61 }
  0x5d   :  { %882 = vmatpush2.bf16.msra.mxu1 %v1246_v62  ;;  %842 = vmatprep.subr.bf16.mxu0 %v1251_v63 }
  0x5e   :  { %883 = vmatprep.subr.bf16.mxu1 %v1254_v0 }
  0x60   :  { %843 = vmatpush2.bf16.msra.mxu0 %v1249_v1 }
  0x61   :  { %884 = vmatpush2.bf16.msra.mxu1 %v1252_v2  ;;  %844 = vmatprep.subr.bf16.mxu0 %v1257_v3  ;;  %v983_v3 = vlaneseq }
  0x62   :  { %885 = vmatprep.subr.bf16.mxu1 %v1260_v4 }
  0x63   :  { %v984_v4 = vshrl.u32 %v983_v3, 7 }
  0x64   :  { %845 = vmatpush2.bf16.msra.mxu0 %v1255_v5 }
  0x65   :  { %886 = vmatpush2.bf16.msra.mxu1 %v1258_v6  ;;  %846 = vmatprep.subr.bf16.mxu0 %v1263_v7  ;;  %v989_v6 = vsub.s32 1, %v984_v4 }
  0x66   :  { %887 = vmatprep.subr.bf16.mxu1 %v1266_v8  ;;  %v985_v8 = vsub.s32 0, %v984_v4 }
  0x68   :  { %847 = vmatpush2.bf16.msra.mxu0 %v1261_v9  ;;  %v981_v9 = vld [vmem:[%s1420_s3] sm:$0x7] }
  0x69   :  { %888 = vmatpush2.bf16.msra.mxu1 %v1264_v10  ;;  %1117 = vmatprep.subr.bf16.mxu0 %v1267_v11 }
  0x6a   :  { %1139 = vmatprep.subr.bf16.mxu1 %v1268_v12 }
  0xeb   :  { %v120_v13 = vpop.f32.mrf.mxu0 }
  0xec   :  { %v161_v14 = vpop.f32.mrf.mxu1  ;;  %v168_v15 = vmax.f32 %v120_v13, 0.0  ;;  %v990_v13 = vrot.slane %v981_v9, %v989_v6 }
  0xed   :  { %v170_v16 = vmax.f32 %v161_v14, 0.0  ;;  %v122_v17 = vpop.f32.mrf.mxu0  ;;  %v993_v14 = vsub.s32 2, %v984_v4 }
  0xee   :  { %v163_v18 = vpop.f32.mrf.mxu1  ;;  %v169_v19 = vmax.f32 %v122_v17, 0.0  ;;  %v1403_v27 = vpack.c.bf16 %v168_v15, %v168_v15 }
  0xef   :  { %v171_v20 = vmax.f32 %v163_v18, 0.0  ;;  %v124_v21 = vpop.f32.mrf.mxu0  ;;  %v1405_v28 = vpack.c.bf16 %v170_v16, %v170_v16  ;;  %v986_v18 = vrot.slane %v981_v9, %v985_v8 }
  0xf0   :  { %v165_v22 = vpop.f32.mrf.mxu1  ;;  %v173_v23 = vpack.c.bf16 %v169_v19, %v169_v19 }
  0xf1   :  { %v175_v24 = vpack.c.bf16 %v171_v20, %v171_v20  ;;  %v125_v29 = vpop.f32.mrf.mxu0 }
  0xf2   :  { %v166_v30 = vpop.f32.mrf.mxu1  ;;  %848 = vmatprep.mubr.bf16.mxu0 %v173_v23 }
  0xf3   :  { %889 = vmatprep.mubr.bf16.mxu1 %v175_v24  ;;  %849 = vmatmul.mubr.bf16.vlgmr.msra.gmra.mxu0 %v1403_v27 }
  0xf4   :  { %890 = vmatmul.mubr.bf16.vlgmr.msra.gmra.mxu1 %v1405_v28  ;;  %1118 = vmatpush3.bf16.msra.mxu0 %v1269_v25  ;;  %v994_v25 = vrot.slane %v981_v9, %v993_v14 }
  0xf5   :  { %1140 = vmatpush3.bf16.msra.mxu1 %v1270_v26  ;;  %930 = vmatprep.mubr.bf16.mxu0 %v173_v23 }
  0xf6   :  { %970 = vmatprep.mubr.bf16.mxu1 %v175_v24  ;;  %1119 = vmatprep.subr.bf16.mxu0 %v1271_v31 }
  0xf7   :  { %1141 = vmatprep.subr.bf16.mxu1 %v1272_v32 }
  0xf8   :  { %1120 = vmatpush3.bf16.msra.mxu0 %v1273_v33 }
  0xf9   :  { %1142 = vmatpush3.bf16.msra.mxu1 %v1274_v34  ;;  %1121 = vmatprep.subr.bf16.mxu0 %v1275_v35 }
  0xfa   :  { %1143 = vmatprep.subr.bf16.mxu1 %v1276_v36 }
  0xfc   :  { %1122 = vmatpush3.bf16.msra.mxu0 %v1277_v37 }
  0xfd   :  { %1144 = vmatpush3.bf16.msra.mxu1 %v1278_v38  ;;  %1123 = vmatprep.subr.bf16.mxu0 %v1279_v39 }
  0xfe   :  { %1145 = vmatprep.subr.bf16.mxu1 %v1280_v40 }
 0x100   :  { %1124 = vmatpush3.bf16.msra.mxu0 %v1281_v41 }
 0x101   :  { %1146 = vmatpush3.bf16.msra.mxu1 %v1282_v42  ;;  %1125 = vmatprep.subr.bf16.mxu0 %v1283_v43 }
 0x102   :  { %1147 = vmatprep.subr.bf16.mxu1 %v1284_v44 }
 0x104   :  { %1126 = vmatpush3.bf16.msra.mxu0 %v1285_v45 }
 0x105   :  { %1148 = vmatpush3.bf16.msra.mxu1 %v1286_v46  ;;  %1127 = vmatprep.subr.bf16.mxu0 %v1287_v47 }
 0x106   :  { %1149 = vmatprep.subr.bf16.mxu1 %v1288_v48 }
 0x108   :  { %1128 = vmatpush3.bf16.msra.mxu0 %v1289_v49 }
 0x109   :  { %1150 = vmatpush3.bf16.msra.mxu1 %v1290_v50  ;;  %1129 = vmatprep.subr.bf16.mxu0 %v1291_v51 }
 0x10a   :  { %1151 = vmatprep.subr.bf16.mxu1 %v1292_v52 }
 0x10c   :  { %1130 = vmatpush3.bf16.msra.mxu0 %v1293_v53 }
 0x10d   :  { %1152 = vmatpush3.bf16.msra.mxu1 %v1294_v54  ;;  %1131 = vmatprep.subr.bf16.mxu0 %v1295_v55 }
 0x10e   :  { %1153 = vmatprep.subr.bf16.mxu1 %v1296_v56 }
 0x110   :  { %1132 = vmatpush3.bf16.msra.mxu0 %v1297_v57 }
 0x111   :  { %1154 = vmatpush3.bf16.msra.mxu1 %v1298_v58 }
 0x113   :  { %931 = vmatmul.mubr.bf16.vlgmr.msra.gmra.mxu0 %v1403_v27 }
 0x114   :  { %971 = vmatmul.mubr.bf16.vlgmr.msra.gmra.mxu1 %v1405_v28 }
 0x1b3   :  { %v850_v59 = vpop.f32.mrf.mxu0 }
 0x1b4   :  { %v891_v60 = vpop.f32.mrf.mxu1 }
 0x1b5   :  { %v852_v61 = vpop.f32.mrf.mxu0  ;;  %v892_v7 = vadd.f32 %v891_v60, %v850_v59 }
 0x1b6   :  { %v893_v62 = vpop.f32.mrf.mxu1 }
 0x1b7   :  { %v854_v63 = vpop.f32.mrf.mxu0  ;;  %v894_v5 = vadd.f32 %v893_v62, %v852_v61  ;;  %v978_v17 = vmax.f32 %v892_v7, 0.0 }
 0x1b8   :  { %v895_v0 = vpop.f32.mrf.mxu1 }
 0x1b9   :  { %v855_v1 = vpop.f32.mrf.mxu0  ;;  %v979_v12 = vmax.f32 %v894_v5, 0.0  ;;  %v998_v28 = vmul.f32 %v986_v18, %v978_v17 }
 0x1ba   :  { %v896_v2 = vpop.f32.mrf.mxu1 }
 0x1bb   :  { %v999_v23 = vmul.f32 %v990_v13, %v979_v12 }
 0x1bd   :  { %v1001_v31 = vadd.f32 %v999_v23, %v998_v28 }
 0x1d3   :  { %v1133_v10 = vpop.f32.mrf.mxu0 }
 0x1d4   :  { %v1155_v11 = vpop.f32.mrf.mxu1 }
 0x1d5   :  { %v1134_v15 = vpop.f32.mrf.mxu0 }
 0x1d6   :  { %v1156_v16 = vpop.f32.mrf.mxu1  ;;  %v1135_v19 = vadd.f32 %v1134_v15, %v1133_v10 }
 0x1d7   :  { %v1157_v20 = vadd.f32 %v1156_v16, %v1155_v11  ;;  %v1136_v21 = vpop.f32.mrf.mxu0 }
 0x1d8   :  { %v1158_v22 = vpop.f32.mrf.mxu1 }
 0x1d9   :  { %v973_v24 = vadd.f32 %v1157_v20, %v1135_v19  ;;  %v1137_v26 = vpop.f32.mrf.mxu0 }
 0x1da   :  { %v1159_v27 = vpop.f32.mrf.mxu1 }
 0x1db   :  { %v980_v29 = vmax.f32 %v973_v24, 0.0 }
 0x1dd   :  { %v1000_v30 = vmul.f32 %v994_v25, %v980_v29 }
 0x1df   :  { %v1002_v32 = vadd.f32 %v1001_v31, %v1000_v30 }
 0x1e1   :  { %1003 = vadd.xlane.f32.xlu0 %v1002_v32 }
 0x26a   :  { %v1004_v33 = vpop.xlane.xlu0 %1003 }
 0x26b   :  { %1006 = vst.msk [vmem:[%s1421_s4] sm:$0xff] %vm1005_vm2, %v1004_v33 }
 0x26c   :  { %1011 = vsyncpa [#allocation3], 1 }
 0x26d   :  { %1012 = vsyncpa [#allocation5], 1 }

</bundles_post_ra>
